<compile_context>
chip_gen: v7x
topology: tpu7x:2x2x1
jax: 0.10.0
libtpu: 0.0.40
codegen_flags: <defaults>
</compile_context>

<pallas_src>
import jax
import jax.numpy as jnp
from jax import lax
from jax.experimental import pallas as pl
from jax.experimental.pallas import tpu as pltpu


def _round_up(x, m):
    return ((x + m - 1) // m) * m


def _device_kind():
    try:
        return jax.devices()[0].device_kind.lower()
    except Exception:
        return ""


_KIND = _device_kind()
_IS_V7 = ("v7" in _KIND) or ("7x" in _KIND)
_IS_V56 = ("v5" in _KIND) or ("v6" in _KIND)
_NUM_TC = 2 if _IS_V7 else 1                       # v7x has 2 TensorCores/chip
_NN_VMEM_LIMIT = (64 if _IS_V56 else 48) * 2 ** 20  # v7x physical VMEM is 64 MiB
_CONV_VMEM_LIMIT = 32 * 2 ** 20


# ----------------------------------------------------------------------------
# Pallas kernel 1: patchify-conv as bf16 matmul + bias + ReLU, tiled over patches
# ----------------------------------------------------------------------------
def _matmul_bias_relu_kernel(a_ref, w_ref, b_ref, o_ref):
    acc = jnp.dot(a_ref[...], w_ref[...], preferred_element_type=jnp.float32)
    o_ref[...] = jnp.maximum(acc + b_ref[...], 0.0)


def matmul_bias_relu(a_bf16, w_p, b_p, *, tp=512):
    # a_bf16: (P, K) bf16, w_p: (K, Cop) bf16, b_p: (1, Cop) f32  ->  (P, Cop) f32
    P, K = a_bf16.shape
    Cop = w_p.shape[1]
    tpp = min(tp, _round_up(P, 8))                 # patch tile (sublane multiple)
    Pp = _round_up(P, tpp)
    a_p = jnp.zeros((Pp, K), jnp.bfloat16).at[:P, :].set(a_bf16)

    out = pl.pallas_call(
        _matmul_bias_relu_kernel,
        out_shape=jax.ShapeDtypeStruct((Pp, Cop), jnp.float32),
        grid_spec=pltpu.PrefetchScalarGridSpec(
            num_scalar_prefetch=0,
            grid=(Pp // tpp,),
            in_specs=[pl.BlockSpec((tpp, K), lambda i: (i, 0)),
                      pl.BlockSpec((K, Cop), lambda i: (0, 0)),   # resident
                      pl.BlockSpec((1, Cop), lambda i: (0, 0))],  # resident
            out_specs=pl.BlockSpec((tpp, Cop), lambda i: (i, 0)),
        ),
        compiler_params=pltpu.CompilerParams(
            dimension_semantics=("parallel",),
            vmem_limit_bytes=_CONV_VMEM_LIMIT),
    )(a_p, w_p, b_p)
    return out[:P]


def prepare_conv(w, b):
    """Pre-pad/cast torch-layout conv weights (Cout, Cin, k, k) once at init."""
    Cout, Cin, k, _ = w.shape
    K = k * k * Cin
    Cop = _round_up(Cout, 128)                     # lane-dense output stores
    # patch vector order is (kh, kw, Cin) -> weight columns must match
    w2 = jnp.transpose(w, (2, 3, 1, 0)).reshape(K, Cout)
    w_p = jnp.zeros((K, Cop), jnp.bfloat16).at[:, :Cout].set(w2.astype(jnp.bfloat16))
    b_p = jnp.zeros((1, Cop), jnp.float32).at[0, :Cout].set(b.astype(jnp.float32))
    return dict(w=w_p, b=b_p, k=k, Cin=Cin, Cout=Cout, K=K, Cop=Cop)


def _im2col_nhwc(x, k):
    # non-overlapping k x k patches, stride k, NHWC input
    B, H, W, C = x.shape
    Ho, Wo = H // k, W // k
    x = x.reshape(B, Ho, k, Wo, k, C)
    x = jnp.transpose(x, (0, 1, 3, 2, 4, 5))       # B, Ho, Wo, kh, kw, C
    return x.reshape(B * Ho * Wo, k * k * C), (B, Ho, Wo)


def patchify_conv_relu(x_nhwc, conv):
    cols, (B, Ho, Wo) = _im2col_nhwc(x_nhwc, conv["k"])
    out = matmul_bias_relu(cols.astype(jnp.bfloat16), conv["w"], conv["b"])
    return out[:, :conv["Cout"]].reshape(B, Ho, Wo, conv["Cout"])


# ----------------------------------------------------------------------------
# Pallas kernel 2: 1-NN search against the coreset memory bank.
#   key = dot(e_bf16, (-2*m)^T_bf16) + ||m||^2_f32    (sqrt-free running key)
#   score = sqrt(key_min + ||e||^2_f32)   at finalize.
# ----------------------------------------------------------------------------
def _nn1_resident_kernel(e_ref, mt_ref, msq_ref, esq_ref, score_ref, loc_ref):
    # Bank fits in a single resident tile: no scratch, no init/compare bookkeeping.
    tm = mt_ref.shape[1]
    key = jnp.dot(e_ref[...], mt_ref[...],
                  preferred_element_type=jnp.float32) + msq_ref[...]   # (tn, tm)
    tile_min = jnp.min(key, axis=1, keepdims=True)                     # (tn, 1)
    col = lax.broadcasted_iota(jnp.int32, (1, tm), 1)                  # lane iota row
    tile_arg = jnp.min(jnp.where(key == tile_min, col, jnp.int32(2 ** 30)),
                       axis=1, keepdims=True)                          # (tn, 1)
    score_ref[...] = jnp.sqrt(jnp.maximum(tile_min + esq_ref[...], 0.0))
    loc_ref[...] = tile_arg


def _nn1_stream_kernel(e_ref, mt_ref, msq_ref, esq_ref, score_ref, loc_ref,
                       min_sc, arg_sc):
    # Bank axis is the OUTER grid axis: the bank streams from HBM exactly once;
    # the running min/argmin per patch row lives in (Np,1) VMEM scratch.
    j = pl.program_id(0)
    i = pl.program_id(1)
    tn = e_ref.shape[0]
    tm = mt_ref.shape[1]
    row0 = pl.multiple_of(i * tn, 8)

    @pl.when(j == 0)
    def _init():
        min_sc[pl.ds(row0, tn), :] = jnp.full((tn, 1), jnp.inf, jnp.float32)
        arg_sc[pl.ds(row0, tn), :] = jnp.zeros((tn, 1), jnp.int32)

    key = jnp.dot(e_ref[...], mt_ref[...],
                  preferred_element_type=jnp.float32) + msq_ref[...]   # (tn, tm)
    tile_min = jnp.min(key, axis=1, keepdims=True)                     # (tn, 1)
    col = lax.broadcasted_iota(jnp.int32, (1, tm), 1)
    tile_arg = jnp.min(jnp.where(key == tile_min, col, jnp.int32(2 ** 30)),
                       axis=1, keepdims=True) + j * tm                 # (tn, 1)

    cur_min = min_sc[pl.ds(row0, tn), :]
    cur_arg = arg_sc[pl.ds(row0, tn), :]
    better = tile_min < cur_min
    arg_sc[pl.ds(row0, tn), :] = jnp.where(better, tile_arg, cur_arg)
    min_sc[pl.ds(row0, tn), :] = jnp.where(better, tile_min, cur_min)

    @pl.when(j == pl.num_programs(0) - 1)
    def _finalize():
        score_ref[...] = jnp.sqrt(jnp.maximum(
            min_sc[pl.ds(row0, tn), :] + esq_ref[...], 0.0))
        loc_ref[...] = arg_sc[pl.ds(row0, tn), :]


def prepare_bank(memory, *, tm=None):
    """One-time preprocessing of the coreset bank (transpose, -2 scale, pad, norms)."""
    M, C = memory.shape
    Cp = _round_up(C, 128)
    Mp128 = _round_up(M, 128)
    if tm is None:
        bank_cap = 8 * 2 ** 20                          # resident bank tile (bf16)
        inter_cap = (32 if _IS_V56 else 16) * 2 ** 20   # ~3 live (tn,tm) f32 temporaries
        tm_cap = min(bank_cap // (Cp * 2), inter_cap // (512 * 4 * 3))
        tm_cap = max(128, (tm_cap // 128) * 128)
        tm = Mp128 if Mp128 <= tm_cap else min(2048, tm_cap)
    Mp = _round_up(M, tm)

    m32 = memory.astype(jnp.float32)
    # bank transposed and pre-scaled by -2 (exact in bf16: sign + exponent shift)
    mt_p = jnp.zeros((Cp, Mp), jnp.bfloat16)
    mt_p = mt_p.at[:C, :M].set((-2.0 * m32.T).astype(jnp.bfloat16))
    # padded bank columns carry a huge-norm sentinel so they never win the min
    msq = jnp.full((1, Mp), 1e30, jnp.float32)
    msq = msq.at[0, :M].set(jnp.sum(m32 * m32, axis=1))
    return dict(mt=mt_p, msq=msq, tm=tm, M=M, C=C, Cp=Cp, Mp=Mp,
                resident=(Mp == tm))


def nearest_neighbor_1(embedding, bank):
    """For each embedding row return (distance, index) of its nearest bank row."""
    N, C = embedding.shape
    Cp, Mp, tm = bank["Cp"], bank["Mp"], bank["tm"]

    # patch tile: 2-way split only where a second TensorCore exists (v7x)
    if _NUM_TC > 1 and N >= 16:
        tn = min(256, _round_up(pl.cdiv(N, 2), 8))
    else:
        tn = min(512, _round_up(N, 8))
    Np = _round_up(N, tn)

    emb32 = embedding.astype(jnp.float32)
    e_p = jnp.zeros((Np, Cp), jnp.bfloat16).at[:N, :C].set(emb32.astype(jnp.bfloat16))
    esq = jnp.zeros((Np, 1), jnp.float32).at[:N, :].set(
        jnp.sum(emb32 * emb32, axis=1, keepdims=True))      # f32 ||e||^2, once

    out_shapes = (jax.ShapeDtypeStruct((Np, 1), jnp.float32),
                  jax.ShapeDtypeStruct((Np, 1), jnp.int32))

    if bank["resident"]:
        score, loc = pl.pallas_call(
            _nn1_resident_kernel,
            out_shape=out_shapes,
            grid_spec=pltpu.PrefetchScalarGridSpec(
                num_scalar_prefetch=0,
                grid=(Np // tn,),
                in_specs=[pl.BlockSpec((tn, Cp), lambda i: (i, 0)),
                          pl.BlockSpec((Cp, tm), lambda i: (0, 0)),   # resident bank
                          pl.BlockSpec((1, tm), lambda i: (0, 0)),
                          pl.BlockSpec((tn, 1), lambda i: (i, 0))],
                out_specs=[pl.BlockSpec((tn, 1), lambda i: (i, 0)),
                           pl.BlockSpec((tn, 1), lambda i: (i, 0))]),
            compiler_params=pltpu.CompilerParams(
                dimension_semantics=("parallel",),
                vmem_limit_bytes=_NN_VMEM_LIMIT),
        )(e_p, bank["mt"], bank["msq"], esq)
    else:
        score, loc = pl.pallas_call(
            _nn1_stream_kernel,
            out_shape=out_shapes,
            grid_spec=pltpu.PrefetchScalarGridSpec(
                num_scalar_prefetch=0,
                grid=(Mp // tm, Np // tn),          # bank axis OUTER: one HBM pass
                in_specs=[pl.BlockSpec((tn, Cp), lambda j, i: (i, 0)),
                          pl.BlockSpec((Cp, tm), lambda j, i: (0, j)),
                          pl.BlockSpec((1, tm), lambda j, i: (0, j)),
                          pl.BlockSpec((tn, 1), lambda j, i: (i, 0))],
                out_specs=[pl.BlockSpec((tn, 1), lambda j, i: (i, 0)),
                           pl.BlockSpec((tn, 1), lambda j, i: (i, 0))],
                scratch_shapes=[pltpu.VMEM((Np, 1), jnp.float32),
                                pltpu.VMEM((Np, 1), jnp.int32)]),
            compiler_params=pltpu.CompilerParams(
                dimension_semantics=("arbitrary", "arbitrary"),
                vmem_limit_bytes=_NN_VMEM_LIMIT),
        )(e_p, bank["mt"], bank["msq"], esq)
    return score[:N, 0], loc[:N, 0]


# ----------------------------------------------------------------------------
# Plain-JAX glue (NHWC bilinear resize, small re-weighting math)
# ----------------------------------------------------------------------------
def bilinear_resize_nhwc(x, out_h, out_w):
    # matches F.interpolate(mode='bilinear', align_corners=False), NHWC layout
    B, H, W, C = x.shape
    if (H, W) == (out_h, out_w):
        return x
    sh, sw = H / out_h, W / out_w
    ys = jnp.maximum((jnp.arange(out_h, dtype=jnp.float32) + 0.5) * sh - 0.5, 0.0)
    xs = jnp.maximum((jnp.arange(out_w, dtype=jnp.float32) + 0.5) * sw - 0.5, 0.0)
    y0 = jnp.floor(ys)
    x0 = jnp.floor(xs)
    wy = (ys - y0)[None, :, None, None]
    wx = (xs - x0)[None, None, :, None]
    y0i = jnp.clip(y0.astype(jnp.int32), 0, H - 1)
    y1i = jnp.clip(y0i + 1, 0, H - 1)
    x0i = jnp.clip(x0.astype(jnp.int32), 0, W - 1)
    x1i = jnp.clip(x0i + 1, 0, W - 1)

    def g(yi, xi):
        return x[:, yi[:, None], xi[None, :], :]     # (B, out_h, out_w, C)

    top = (1.0 - wx) * g(y0i, x0i) + wx * g(y0i, x1i)
    bot = (1.0 - wx) * g(y1i, x0i) + wx * g(y1i, x1i)
    return (1.0 - wy) * top + wy * bot


def euclidean_dist(x, y):
    x_norm = jnp.sum(x * x, axis=-1, keepdims=True)
    y_norm = jnp.sum(y * y, axis=-1, keepdims=True)
    res = (x_norm - 2.0 * jnp.matmul(x, jnp.swapaxes(y, -2, -1))
           + jnp.swapaxes(y_norm, -2, -1))
    return jnp.sqrt(jnp.clip(res, 0.0, None))


# ----------------------------------------------------------------------------
# PatchCore (inference) forward
# ----------------------------------------------------------------------------
class PatchCoreTPU:
    def __init__(self, key, c1=32, c2=64, memory_size=512, num_neighbors=9):
        k1, k2, k3, k4, k5 = jax.random.split(key, 5)
        # synthetic deterministic "backbone" weights, pre-padded once
        w1 = jax.random.normal(k1, (c1, 3, 4, 4), jnp.float32) * 0.1
        b1 = jax.random.normal(k2, (c1,), jnp.float32) * 0.01
        w2 = jax.random.normal(k3, (c2, c1, 2, 2), jnp.float32) * 0.1
        b2 = jax.random.normal(k4, (c2,), jnp.float32) * 0.01
        self.conv1 = prepare_conv(w1, b1)
        self.conv2 = prepare_conv(w2, b2)
        # synthetic coreset memory bank (self.embeddings[0] in the torch module)
        self.memory_bank = jax.random.normal(k5, (memory_size, c1 + c2), jnp.float32)
        self.bank = prepare_bank(self.memory_bank)   # transpose/cast/pad/norms once
        self.num_neighbors = num_neighbors

    # --- feature_extractor: two patchify conv+ReLU stages (stride 4 and 8), NHWC ---
    def feature_extractor(self, x_nhwc):
        f2 = patchify_conv_relu(x_nhwc, self.conv1)   # "layer2", stride 4
        f3 = patchify_conv_relu(f2, self.conv2)       # "layer3", stride 8
        return {"layer2": f2, "layer3": f3}

    def generate_embeddings(self, feats):
        th, tw = feats[min(feats.keys())].shape[1:3]
        vals = [bilinear_resize_nhwc(v, th, tw) for v in feats.values()]
        return jnp.concatenate(vals, axis=-1)          # NHWC concat on channels

    def embed(self, x_nchw):
        x_nhwc = jnp.transpose(x_nchw, (0, 2, 3, 1))
        return self.generate_embeddings(self.feature_extractor(x_nhwc))

    def compute_anomaly_score(self, patch_scores, locations, embedding):
        if self.num_neighbors == 1:
            return jnp.max(patch_scores, axis=1)
        B, Np = patch_scores.shape
        bidx = jnp.arange(B)
        max_patches = jnp.argmax(patch_scores, axis=1)
        max_feats = embedding.reshape(B, Np, -1)[bidx, max_patches]     # (B, C)
        score = patch_scores[bidx, max_patches]                         # (B,)
        nn_index = locations[bidx, max_patches]                         # (B,)
        nn_sample = self.memory_bank[nn_index]                          # (B, C)
        M = self.memory_bank.shape[0]
        k = min(self.num_neighbors, M)
        dist = euclidean_dist(nn_sample, self.memory_bank)              # (B, M)
        _, support = jax.lax.top_k(-dist, k)                            # (B, k)
        distances = euclidean_dist(max_feats[:, None, :],
                                   self.memory_bank[support])           # (B,1,k)
        weights = (1.0 - jax.nn.softmax(distances[:, 0, :], axis=1))[..., 0]
        return weights * score

    def __call__(self, x):
        batch_size = x.shape[0]
        embedding_map = self.embed(x)                                   # (B, H, W, C)
        _, emb_h, emb_w, _ = embedding_map.shape
        embedding = embedding_map.reshape(-1, embedding_map.shape[-1])  # NHWC rows
        # hot path: 1-NN against the memory bank, done in the Pallas kernel
        patch_scores, locations = nearest_neighbor_1(embedding, self.bank)
        patch_scores = patch_scores.reshape(batch_size, -1)
        locations = locations.reshape(batch_size, -1)
        pred_score = self.compute_anomaly_score(patch_scores, locations, embedding)
        # mirrors the (unused) reshape in the torch module; not returned
        _ = patch_scores.reshape(batch_size, 1, emb_h, emb_w)
        return {"score": pred_score}


if __name__ == "__main__":
    key = jax.random.PRNGKey(0)
    kx, kp = jax.random.split(key)
    x = jax.random.normal(kx, (2, 3, 32, 32), jnp.float32)   # NCHW like PyTorch
    model = PatchCoreTPU(kp)
    out = model(x)
    score = jax.block_until_ready(out["score"])
    assert score.shape == (2,) and bool(jnp.all(jnp.isfinite(score)))

    # Also exercise + cross-check the streamed-bank kernel (bank tile forced small
    # so the outer-bank-axis path runs even with this small synthetic coreset).
    emb_map = model.embed(x)
    embedding = emb_map.reshape(-1, emb_map.shape[-1])
    s_res, l_res = nearest_neighbor_1(embedding, model.bank)
    bank_stream = prepare_bank(model.memory_bank, tm=128)
    s_str, l_str = nearest_neighbor_1(embedding, bank_stream)
    s_res, s_str, l_res, l_str = jax.block_until_ready((s_res, s_str, l_res, l_str))
    assert bool(jnp.all(l_res == l_str))
    assert bool(jnp.allclose(s_res, s_str, rtol=1e-4, atol=1e-5))
    print("KERNEL_OK")
</pallas_src>

<mosaic_0001>
module attributes {stable_mosaic.version = 11 : i64} {
  func.func @_matmul_bias_relu_kernel(%arg0: i32, %arg1: memref<128x48xbf16, #tpu.memory_space<vmem>>, %arg2: memref<48x128xbf16, #tpu.memory_space<vmem>>, %arg3: memref<1x128xf32, #tpu.memory_space<vmem>>, %arg4: memref<128x128xf32, #tpu.memory_space<vmem>>) attributes {dimension_semantics = [#tpu.dimension_semantics<parallel>], iteration_bounds = array<i64: 1>, scalar_prefetch = 0 : i64, scratch_operands = 0 : i64, tpu.core_type = #tpu.core_type<tc>, window_params = [{transform_indices = @transform_0, window_bounds = array<i64: 128, 48>}, {pipeline_mode = #tpu.pipeline_mode<synchronous>, transform_indices = @transform_1, window_bounds = array<i64: 48, 128>}, {pipeline_mode = #tpu.pipeline_mode<synchronous>, transform_indices = @transform_2, window_bounds = array<i64: 1, 128>}, {transform_indices = @transform_3, window_bounds = array<i64: 128, 128>}]} {
    %c0 = arith.constant 0 : index
    %c0_0 = arith.constant 0 : index
    %0 = vector.load %arg1[%c0, %c0_0] : memref<128x48xbf16, #tpu.memory_space<vmem>>, vector<128x48xbf16>
    %c0_1 = arith.constant 0 : index
    %c0_2 = arith.constant 0 : index
    %1 = vector.load %arg2[%c0_1, %c0_2] : memref<48x128xbf16, #tpu.memory_space<vmem>>, vector<48x128xbf16>
    %cst = arith.constant dense<0.000000e+00> : vector<128x128xf32>
    %2 = tpu.matmul %0, %1, %cst {dimension_numbers = #tpu.dot_dimension_numbers<[1], [0], [0], [1], [0, 0, 1, 1], [], []>} : vector<128x48xbf16>, vector<48x128xbf16>, vector<128x128xf32> -> vector<128x128xf32>
    %c0_3 = arith.constant 0 : index
    %c0_4 = arith.constant 0 : index
    %3 = vector.load %arg3[%c0_3, %c0_4] : memref<1x128xf32, #tpu.memory_space<vmem>>, vector<1x128xf32>
    %4 = vector.broadcast %3 : vector<1x128xf32> to vector<128x128xf32>
    %5 = arith.addf %2, %4 : vector<128x128xf32>
    %cst_5 = arith.constant 0.000000e+00 : f32
    %6 = vector.broadcast %cst_5 : f32 to vector<128x128xf32>
    %7 = arith.maximumf %5, %6 : vector<128x128xf32>
    %c0_6 = arith.constant 0 : index
    %c0_7 = arith.constant 0 : index
    %8 = vector.load %arg4[%c0_6, %c0_7] : memref<128x128xf32, #tpu.memory_space<vmem>>, vector<128x128xf32>
    tpu.vector_store %arg4[%c0_6, %c0_7], %7 {strides = array<i32>} : memref<128x128xf32, #tpu.memory_space<vmem>>, vector<128x128xf32>,
    return
  }
  func.func @transform_0(%arg0: i32) -> (i32, i32) {
    %c0_i32 = arith.constant 0 : i32
    %c0_i32_0 = arith.constant 0 : i32
    return %arg0, %c0_i32 : i32, i32
  }
  func.func @transform_1(%arg0: i32) -> (i32, i32) {
    %c0_i32 = arith.constant 0 : i32
    %c0_i32_0 = arith.constant 0 : i32
    %c0_i32_1 = arith.constant 0 : i32
    return %c0_i32, %c0_i32_0 : i32, i32
  }
  func.func @transform_2(%arg0: i32) -> (i32, i32) {
    %c0_i32 = arith.constant 0 : i32
    %c0_i32_0 = arith.constant 0 : i32
    %c0_i32_1 = arith.constant 0 : i32
    return %c0_i32, %c0_i32_0 : i32, i32
  }
  func.func @transform_3(%arg0: i32) -> (i32, i32) {
    %c0_i32 = arith.constant 0 : i32
    %c0_i32_0 = arith.constant 0 : i32
    return %arg0, %c0_i32 : i32, i32
  }
}

</mosaic_0001>

<bundles_post_ra>
// kernel: tpu_custom_call.1
= control target key start
LH: loop header
LB: loop body
LE: loop exit
PB: predicated region body
PF: predicated region fallthrough
CT: control target
= control target key end

     0   :  { %vm103_vm0 = vcmask 392192   ;;  %s449_s0 = inlined_call_operand.vmem [shape: bf16[128,48], index: 0, kind: input, shape index: {}]   ;;  %s450_s1 = inlined_call_operand.vmem [shape: bf16[48,128], index: 1, kind: input, shape index: {}]   ;;  %s451_s2 = inlined_call_operand.vmem [shape: f32[1,128], index: 2, kind: input, shape index: {}]   ;;  %s452_s3 = inlined_call_operand.hbm [shape: f32[128,128], index: 3, kind: output, shape index: {}]  }
   0x1   :  { %v335_v0 = vld [vmem:[%s450_s1] sm:$0xff]   ;;  %v336_v1 = vld [vmem:[%s450_s1 + $0x8] sm:$0xff]   ;;  %v337_v2 = vld [vmem:[%s450_s1 + $0x10] sm:$0xff]  }
   0x2   :  { %304 = vmatprep.subr.bf16.mxu0 %v335_v0  ;;  %326 = vmatprep.subr.bf16.mxu1 %v335_v0  ;;  %v338_v3 = vld [vmem:[%s449_s0] sm:$0xff]   ;;  %v340_v5 = vld [vmem:[%s449_s0 + $0x8] sm:$0xff]   ;;  %v342_v7 = vld [vmem:[%s449_s0 + $0x10] sm:$0xff]  }
   0x3   :  { %305 = vmatpush3.bf16.msra.mxu0 %v335_v0  ;;  %329 = vmatpush3.bf16.msra.mxu1 %v335_v0  ;;  %v339_v4 = vld [vmem:[%s449_s0 + $0x20] sm:$0xff]   ;;  %v341_v6 = vld [vmem:[%s449_s0 + $0x28] sm:$0xff]   ;;  %v343_v8 = vld [vmem:[%s449_s0 + $0x30] sm:$0xff]  }
   0x4   :  { %306 = vmatprep.subr.bf16.mxu0 %v336_v1  ;;  %327 = vmatprep.subr.bf16.mxu1 %v336_v1 }
   0x5   :  { %310 = vmatprep.mubr.msk.bf16.mxu0 %vm103_vm0, %v338_v3  ;;  %318 = vmatprep.mubr.msk.bf16.mxu1 %vm103_vm0, %v339_v4 }
   0x7   :  { %307 = vmatpush3.bf16.msra.mxu0 %v336_v1  ;;  %330 = vmatpush3.bf16.msra.mxu1 %v336_v1 }
   0x8   :  { %308 = vmatprep.subr.bf16.mxu0 %v337_v2  ;;  %328 = vmatprep.subr.bf16.mxu1 %v337_v2 }
   0xb   :  { %309 = vmatpush3.bf16.msra.mxu0 %v337_v2  ;;  %331 = vmatpush3.bf16.msra.mxu1 %v337_v2 }
   0xc   :  { %8 = vsyncpa [#allocation3], 0  ;;  %v344_v9 = vld [vmem:[%s449_s0 + $0x18] sm:$0xff]   ;;  %v273_v11 = vld [vmem:[%s451_s2] ss:$0 sm:$0xff] }
   0xd   :  { %v345_v10 = vld [vmem:[%s449_s0 + $0x38] sm:$0xff]   ;;  %s370_s0 = smov [#allocation2]  }
   0xe   :  { %311 = vmatmul.mubr.msk.bf16.vlgmr.msra.gmra.mrb[0].mxu0 %vm103_vm0, %v340_v5  ;;  %319 = vmatmul.mubr.msk.bf16.vlgmr.msra.gmra.mrb[0].mxu1 %vm103_vm0, %v341_v6  ;;  %s262_s2 = sshll.u32 %s370_s0, 4  ;;  %s263_s2 = int_to_ptr.vmem [resolvable:$true] %s262_s2 }
   0xf   :  { %314 = vmatprep.mubr.msk.bf16.mxu0 %vm103_vm0, %v342_v7  ;;  %322 = vmatprep.mubr.msk.bf16.mxu1 %vm103_vm0, %v343_v8  ;;  %s346_s8 = scalar_lea.vmem %s263_s2, 2048  ;;  %p351_p1 = scmp.lt.s32.totalorder %s263_s2, %s263_s2 }
  0x10   :  { %p347_p0 = scmp.ne.s32.totalorder %s263_s2, %s346_s8  ;;  %p352_p2 = scmp.lt.s32.totalorder %s346_s8, %s346_s8 }
  0x12   :  { %p353_p3 = por %p352_p2, %p351_p1 }
  0x14   :  { %p354_p4 = pnand %p353_p3, %p347_p0 }
  0x16   :  { %315 = vmatmul.mubr.msk.bf16.gmra.mrb[4].mxu0 %vm103_vm0, %v344_v9  ;;  %323 = vmatmul.mubr.msk.bf16.gmra.mrb[4].mxu1 %vm103_vm0, %v345_v10 }
  0xe1   :  { %v312_v12 = vpop.f32.mrb[0].mxu0  ;;  %v320_v13 = vpop.f32.mrb[0].mxu1 }
  0xe2   :  { %v171_v14 = vadd.f32 %v312_v12, %v273_v11  ;;  %v203_v15 = vadd.f32 %v320_v13, %v273_v11  ;;  %v162_v16 = vpop.f32.mrb[1].mxu0  ;;  %v194_v17 = vpop.f32.mrb[1].mxu1 }
  0xe3   :  { %v163_v18 = vadd.f32 %v273_v11, %v162_v16  ;;  %v195_v19 = vadd.f32 %v273_v11, %v194_v17  ;;  %v313_v20 = vpop.f32.mrb[2].mxu0  ;;  %v321_v21 = vpop.f32.mrb[2].mxu1 }
  0xe4   :  { %v227_v22 = vmax.f32 %v171_v14, 0.0  ;;  %v235_v23 = vmax.f32 %v203_v15, 0.0  ;;  %v174_v24 = vadd.f32 %v313_v20, %v273_v11  ;;  %v206_v25 = vadd.f32 %v321_v21, %v273_v11  ;;  %v165_v26 = vpop.f32.mrb[3].mxu0  ;;  %v197_v27 = vpop.f32.mrb[3].mxu1 }
  0xe5   :  { %v225_v28 = vmax.f32 %v163_v18, 0.0  ;;  %v233_v29 = vmax.f32 %v195_v19, 0.0  ;;  %v166_v30 = vadd.f32 %v273_v11, %v165_v26  ;;  %v198_v31 = vadd.f32 %v273_v11, %v197_v27 }
  0xe6   :  { %243 = vst [vmem:[#allocation2 + $0x10] sm:$0xff] %v227_v22  ;;  %251 = vst [vmem:[#allocation2 + $0x50] sm:$0xff] %v235_v23  ;;  %v228_v32 = vmax.f32 %v174_v24, 0.0  ;;  %v236_v33 = vmax.f32 %v206_v25, 0.0 }
  0xe7   :  { %241 = vst [vmem:[#allocation2] sm:$0xff] %v225_v28  ;;  %249 = vst [vmem:[#allocation2 + $0x40] sm:$0xff] %v233_v29  ;;  %v226_v34 = vmax.f32 %v166_v30, 0.0  ;;  %v234_v35 = vmax.f32 %v198_v31, 0.0 }
  0xe8   :  { %244 = vst [vmem:[#allocation2 + $0x18] sm:$0xff] %v228_v32  ;;  %252 = vst [vmem:[#allocation2 + $0x58] sm:$0xff] %v236_v33 }
  0xe9   :  { %242 = vst [vmem:[#allocation2 + $0x8] sm:$0xff] %v226_v34  ;;  %250 = vst [vmem:[#allocation2 + $0x48] sm:$0xff] %v234_v35  ;;  %v316_v36 = vpop.f32.mrb[4].mxu0  ;;  %v324_v37 = vpop.f32.mrb[4].mxu1 }
  0xea   :  { %v187_v38 = vadd.f32 %v316_v36, %v273_v11  ;;  %v219_v39 = vadd.f32 %v324_v37, %v273_v11  ;;  %v178_v40 = vpop.f32.mrb[5].mxu0  ;;  %v210_v41 = vpop.f32.mrb[5].mxu1 }
  0xeb   :  { %v179_v42 = vadd.f32 %v273_v11, %v178_v40  ;;  %v211_v43 = vadd.f32 %v273_v11, %v210_v41  ;;  %v317_v44 = vpop.f32.mrb[6].mxu0  ;;  %v325_v45 = vpop.f32.mrb[6].mxu1 }
  0xec   :  { %v231_v46 = vmax.f32 %v187_v38, 0.0  ;;  %v239_v47 = vmax.f32 %v219_v39, 0.0  ;;  %v190_v48 = vadd.f32 %v317_v44, %v273_v11  ;;  %v222_v49 = vadd.f32 %v325_v45, %v273_v11  ;;  %v181_v50 = vpop.f32.mrb[7].mxu0  ;;  %v213_v51 = vpop.f32.mrb[7].mxu1 }
  0xed   :  { %v229_v52 = vmax.f32 %v179_v42, 0.0  ;;  %v237_v53 = vmax.f32 %v211_v43, 0.0  ;;  %v182_v54 = vadd.f32 %v273_v11, %v181_v50  ;;  %v214_v55 = vadd.f32 %v273_v11, %v213_v51 }
  0xee   :  { %247 = vst [vmem:[#allocation2 + $0x30] sm:$0xff] %v231_v46  ;;  %255 = vst [vmem:[#allocation2 + $0x70] sm:$0xff] %v239_v47  ;;  %v232_v56 = vmax.f32 %v190_v48, 0.0  ;;  %v240_v57 = vmax.f32 %v222_v49, 0.0 }
  0xef   :  { %245 = vst [vmem:[#allocation2 + $0x20] sm:$0xff] %v229_v52  ;;  %253 = vst [vmem:[#allocation2 + $0x60] sm:$0xff] %v237_v53  ;;  %v230_v58 = vmax.f32 %v182_v54, 0.0  ;;  %v238_v59 = vmax.f32 %v214_v55, 0.0 }
  0xf0   :  { %248 = vst [vmem:[#allocation2 + $0x38] sm:$0xff] %v232_v56  ;;  %256 = vst [vmem:[#allocation2 + $0x78] sm:$0xff] %v240_v57 }
  0xf1   :  { %246 = vst [vmem:[#allocation2 + $0x28] sm:$0xff] %v230_v58  ;;  %254 = vst [vmem:[#allocation2 + $0x68] sm:$0xff] %v238_v59 }
  0xf2   :  { %357 = shalt.err (!%p354_p4)
}
  0xf3   :  { %s358_s11 = scalar_lea.hbm %s452_s3, 2048 }
  0xf4   :  { %p359_p5 = scmp.ne.s32.totalorder %s452_s3, %s358_s11  ;;  %p362_p6 = scmp.lt.u32.totalorder %s358_s11, %s452_s3 }
  0xf6   :  { %p364_p7 = pnand %p362_p6, %p359_p5 }
  0xf8   :  { %367 = shalt.err (!%p364_p7)
}
  0xf9   :  { %s371_s16 = smov 128   ;;  %s372_s17 = smov 8  }
  0xfa   :  { %268 = dma.vmem_to_hbm [thread:$0]  %s263_s2, 2048, %s452_s3, [#allocation3], %s371_s16, %s371_s16, %s372_s17  }
  0xfb   :  { %368 = dma.done.wait [#allocation3], 2048  }
  0xfc   :  { %369 = vsyncadd [#allocation3], 4294965248 }
  0xfd   :  { %272 = vsyncpa [#allocation3], 1 }

</bundles_post_ra>
